<compile_context>
chip_gen: v7x
topology: tpu7x:2x2x1
jax: 0.10.0
libtpu: 0.0.40
codegen_flags: <defaults>
</compile_context>

<pallas_src>
import jax
import jax.numpy as jnp
import numpy as np
from jax.experimental import pallas as pl
from jax.experimental.pallas import tpu as pltpu


def se_layer_kernel(x_ref, xse_ref, wr_ref, br_ref, we_ref, be_ref, out_ref):
    # Refs: x (C, T) f32, x_se (C, T) f32, wr/we (C, C) bf16, br/be (C, 1) f32.
    s = xse_ref[...].astype(wr_ref.dtype)                      # bf16 for MXU
    # conv_reduce (1x1): (C_out, C_in) @ (C_in, T), f32 accumulation.
    h = jnp.dot(wr_ref[...], s, preferred_element_type=jnp.float32)
    h = jnp.maximum(h + br_ref[...], 0.0)                      # bias bcast on lanes
    # conv_expand (1x1)
    g = jnp.dot(we_ref[...], h.astype(we_ref.dtype),
                preferred_element_type=jnp.float32)
    g = g + be_ref[...]
    gate = jax.nn.sigmoid(g)                                   # EUP path
    out_ref[...] = (x_ref[...] * gate).astype(out_ref.dtype)


def _round_up(v, m):
    return ((v + m - 1) // m) * m


def se_layer_forward(x, x_se, w_reduce, b_reduce, w_expand, b_expand, *,
                     tile_hw=2048, compute_dtype=jnp.bfloat16,
                     vmem_limit_bytes=None):
    """SELayer forward.

    x, x_se             : (B, C, H, W) float32, native NCHW
    w_reduce / w_expand : (C_out, C_in)  == PyTorch conv.weight[:, :, 0, 0]
    b_reduce / b_expand : (C,)
    returns (B, C, H, W) float32 == x * sigmoid(We(relu(Wr(x_se)+br))+be)
    """
    bsz, c, hh, ww = x.shape
    hw = hh * ww

    # Free reshape (contiguous trailing-dim merge): spatial -> lane axis.
    x3 = x.reshape(bsz, c, hw)
    s3 = x_se.reshape(bsz, c, hw)

    # Pick a lane-dense spatial tile; pad H*W only if the tile doesn't divide.
    tile = _round_up(min(tile_hw, _round_up(hw, 128)), 128)
    hw_p = _round_up(hw, tile)
    if hw_p != hw:
        pad = ((0, 0), (0, 0), (0, hw_p - hw))
        x3 = jnp.pad(x3, pad)
        s3 = jnp.pad(s3, pad)

    wr = jnp.asarray(w_reduce, compute_dtype)            # (C_out, C_in)
    we = jnp.asarray(w_expand, compute_dtype)
    br = jnp.asarray(b_reduce, jnp.float32).reshape(c, 1)
    be = jnp.asarray(b_expand, jnp.float32).reshape(c, 1)

    const = lambda b, i: (0, 0)
    grid_spec = pltpu.PrefetchScalarGridSpec(
        num_scalar_prefetch=0,
        grid=(bsz, hw_p // tile),
        in_specs=[
            pl.BlockSpec((None, c, tile), lambda b, i: (b, 0, i)),  # x    (f32)
            pl.BlockSpec((None, c, tile), lambda b, i: (b, 0, i)),  # x_se (f32)
            pl.BlockSpec((c, c), const),                            # w_reduce
            pl.BlockSpec((c, 1), const),                            # b_reduce
            pl.BlockSpec((c, c), const),                            # w_expand
            pl.BlockSpec((c, 1), const),                            # b_expand
        ],
        out_specs=pl.BlockSpec((None, c, tile), lambda b, i: (b, 0, i)),
    )

    cp_kwargs = dict(dimension_semantics=("parallel", "parallel"))
    if vmem_limit_bytes is not None:
        cp_kwargs["vmem_limit_bytes"] = vmem_limit_bytes

    out = pl.pallas_call(
        se_layer_kernel,
        out_shape=jax.ShapeDtypeStruct((bsz, c, hw_p), jnp.float32),
        grid_spec=grid_spec,
        compiler_params=pltpu.CompilerParams(**cp_kwargs),
    )(x3, s3, wr, br, we, be)

    if hw_p != hw:
        out = out[:, :, :hw]
    return out.reshape(bsz, c, hh, ww)


def reference_forward(x, x_se, w_reduce, b_reduce, w_expand, b_expand):
    """Pure-JAX f32 reference matching the PyTorch SELayer exactly.

    Weights use the PyTorch conv layout (C_out, C_in)."""
    h = jnp.einsum('oc,bchw->bohw', w_reduce, x_se) \
        + b_reduce[None, :, None, None]
    h = jnp.maximum(h, 0.0)
    g = jnp.einsum('oc,bchw->bohw', w_expand, h) \
        + b_expand[None, :, None, None]
    return x * jax.nn.sigmoid(g)


if __name__ == "__main__":
    batch, channels, spatial = 2, 64, 16     # H*W = 256 lanes per image
    key = jax.random.PRNGKey(0)
    kx, ks, k0, k1, k2, k3 = jax.random.split(key, 6)

    x = jax.random.normal(kx, (batch, channels, spatial, spatial), jnp.float32)
    x_se = jax.random.normal(ks, (batch, channels, spatial, spatial), jnp.float32)

    scale = 1.0 / np.sqrt(channels)
    w_reduce = jax.random.normal(k0, (channels, channels), jnp.float32) * scale
    b_reduce = jax.random.normal(k1, (channels,), jnp.float32) * 0.01
    w_expand = jax.random.normal(k2, (channels, channels), jnp.float32) * scale
    b_expand = jax.random.normal(k3, (channels,), jnp.float32) * 0.01

    out = se_layer_forward(x, x_se, w_reduce, b_reduce, w_expand, b_expand)
    out = jax.block_until_ready(out)

    ref = reference_forward(x, x_se, w_reduce, b_reduce, w_expand, b_expand)
    # bf16 MXU operands with f32 accumulation -> relaxed tolerance vs f32 ref.
    np.testing.assert_allclose(np.asarray(out), np.asarray(ref),
                               rtol=5e-2, atol=5e-2)
    print("KERNEL_OK")
</pallas_src>

<mosaic_0001>
module attributes {stable_mosaic.version = 11 : i64} {
  func.func @se_layer_kernel(%arg0: i32, %arg1: i32, %arg2: memref<1x64x256xf32, #tpu.memory_space<vmem>>, %arg3: memref<1x64x256xf32, #tpu.memory_space<vmem>>, %arg4: memref<64x64xbf16, #tpu.memory_space<vmem>>, %arg5: memref<64x1xf32, #tpu.memory_space<vmem>>, %arg6: memref<64x64xbf16, #tpu.memory_space<vmem>>, %arg7: memref<64x1xf32, #tpu.memory_space<vmem>>, %arg8: memref<1x64x256xf32, #tpu.memory_space<vmem>>) attributes {dimension_semantics = [#tpu.dimension_semantics<parallel>, #tpu.dimension_semantics<parallel>], iteration_bounds = array<i64: 2, 1>, scalar_prefetch = 0 : i64, scratch_operands = 0 : i64, tpu.core_type = #tpu.core_type<tc>, window_params = [{transform_indices = @transform_0, window_bounds = array<i64: 1, 64, 256>}, {transform_indices = @transform_1, window_bounds = array<i64: 1, 64, 256>}, {pipeline_mode = #tpu.pipeline_mode<synchronous>, transform_indices = @transform_2, window_bounds = array<i64: 64, 64>}, {pipeline_mode = #tpu.pipeline_mode<synchronous>, transform_indices = @transform_3, window_bounds = array<i64: 64, 1>}, {pipeline_mode = #tpu.pipeline_mode<synchronous>, transform_indices = @transform_4, window_bounds = array<i64: 64, 64>}, {pipeline_mode = #tpu.pipeline_mode<synchronous>, transform_indices = @transform_5, window_bounds = array<i64: 64, 1>}, {transform_indices = @transform_6, window_bounds = array<i64: 1, 64, 256>}]} {
    %c0 = arith.constant 0 : index
    %c0_0 = arith.constant 0 : index
    %c0_1 = arith.constant 0 : index
    %0 = vector.load %arg3[%c0, %c0_0, %c0_1] : memref<1x64x256xf32, #tpu.memory_space<vmem>>, vector<1x64x256xf32>
    %1 = vector.shape_cast %0 : vector<1x64x256xf32> to vector<64x256xf32>
    %2 = arith.truncf %1 : vector<64x256xf32> to vector<64x256xbf16>
    %c0_2 = arith.constant 0 : index
    %c0_3 = arith.constant 0 : index
    %3 = vector.load %arg4[%c0_2, %c0_3] : memref<64x64xbf16, #tpu.memory_space<vmem>>, vector<64x64xbf16>
    %cst = arith.constant dense<0.000000e+00> : vector<64x256xf32>
    %4 = tpu.matmul %3, %2, %cst {dimension_numbers = #tpu.dot_dimension_numbers<[1], [0], [0], [1], [0, 0, 1, 1], [], []>} : vector<64x64xbf16>, vector<64x256xbf16>, vector<64x256xf32> -> vector<64x256xf32>
    %c0_4 = arith.constant 0 : index
    %c0_5 = arith.constant 0 : index
    %5 = vector.load %arg5[%c0_4, %c0_5] : memref<64x1xf32, #tpu.memory_space<vmem>>, vector<64x1xf32>
    %6 = vector.broadcast %5 : vector<64x1xf32> to vector<64x256xf32>
    %7 = arith.addf %4, %6 : vector<64x256xf32>
    %cst_6 = arith.constant 0.000000e+00 : f32
    %8 = vector.broadcast %cst_6 : f32 to vector<64x256xf32>
    %9 = arith.maximumf %7, %8 : vector<64x256xf32>
    %c0_7 = arith.constant 0 : index
    %c0_8 = arith.constant 0 : index
    %10 = vector.load %arg6[%c0_7, %c0_8] : memref<64x64xbf16, #tpu.memory_space<vmem>>, vector<64x64xbf16>
    %11 = arith.truncf %9 : vector<64x256xf32> to vector<64x256xbf16>
    %cst_9 = arith.constant dense<0.000000e+00> : vector<64x256xf32>
    %12 = tpu.matmul %10, %11, %cst_9 {dimension_numbers = #tpu.dot_dimension_numbers<[1], [0], [0], [1], [0, 0, 1, 1], [], []>} : vector<64x64xbf16>, vector<64x256xbf16>, vector<64x256xf32> -> vector<64x256xf32>
    %c0_10 = arith.constant 0 : index
    %c0_11 = arith.constant 0 : index
    %13 = vector.load %arg7[%c0_10, %c0_11] : memref<64x1xf32, #tpu.memory_space<vmem>>, vector<64x1xf32>
    %14 = vector.broadcast %13 : vector<64x1xf32> to vector<64x256xf32>
    %15 = arith.addf %12, %14 : vector<64x256xf32>
    %16 = arith.negf %15 : vector<64x256xf32>
    %17 = math.exp %16 : vector<64x256xf32>
    %cst_12 = arith.constant 1.000000e+00 : f32
    %18 = vector.broadcast %cst_12 : f32 to vector<64x256xf32>
    %19 = arith.addf %18, %17 : vector<64x256xf32>
    %20 = arith.divf %18, %19 : vector<64x256xf32>
    %c0_13 = arith.constant 0 : index
    %c0_14 = arith.constant 0 : index
    %c0_15 = arith.constant 0 : index
    %21 = vector.load %arg2[%c0_13, %c0_14, %c0_15] : memref<1x64x256xf32, #tpu.memory_space<vmem>>, vector<1x64x256xf32>
    %22 = vector.shape_cast %21 : vector<1x64x256xf32> to vector<64x256xf32>
    %23 = arith.mulf %22, %20 : vector<64x256xf32>
    %c0_16 = arith.constant 0 : index
    %c0_17 = arith.constant 0 : index
    %c0_18 = arith.constant 0 : index
    %24 = vector.load %arg8[%c0_16, %c0_17, %c0_18] : memref<1x64x256xf32, #tpu.memory_space<vmem>>, vector<1x64x256xf32>
    %25 = vector.shape_cast %24 : vector<1x64x256xf32> to vector<64x256xf32>
    %26 = vector.shape_cast %23 : vector<64x256xf32> to vector<1x64x256xf32>
    tpu.vector_store %arg8[%c0_16, %c0_17, %c0_18], %26 {strides = array<i32>} : memref<1x64x256xf32, #tpu.memory_space<vmem>>, vector<1x64x256xf32>,
    return
  }
  func.func @transform_0(%arg0: i32, %arg1: i32) -> (i32, i32, i32) {
    %c0_i32 = arith.constant 0 : i32
    %c0_i32_0 = arith.constant 0 : i32
    return %arg0, %c0_i32, %arg1 : i32, i32, i32
  }
  func.func @transform_1(%arg0: i32, %arg1: i32) -> (i32, i32, i32) {
    %c0_i32 = arith.constant 0 : i32
    %c0_i32_0 = arith.constant 0 : i32
    return %arg0, %c0_i32, %arg1 : i32, i32, i32
  }
  func.func @transform_2(%arg0: i32, %arg1: i32) -> (i32, i32) {
    %c0_i32 = arith.constant 0 : i32
    %c0_i32_0 = arith.constant 0 : i32
    %c0_i32_1 = arith.constant 0 : i32
    return %c0_i32, %c0_i32_0 : i32, i32
  }
  func.func @transform_3(%arg0: i32, %arg1: i32) -> (i32, i32) {
    %c0_i32 = arith.constant 0 : i32
    %c0_i32_0 = arith.constant 0 : i32
    %c0_i32_1 = arith.constant 0 : i32
    return %c0_i32, %c0_i32_0 : i32, i32
  }
  func.func @transform_4(%arg0: i32, %arg1: i32) -> (i32, i32) {
    %c0_i32 = arith.constant 0 : i32
    %c0_i32_0 = arith.constant 0 : i32
    %c0_i32_1 = arith.constant 0 : i32
    return %c0_i32, %c0_i32_0 : i32, i32
  }
  func.func @transform_5(%arg0: i32, %arg1: i32) -> (i32, i32) {
    %c0_i32 = arith.constant 0 : i32
    %c0_i32_0 = arith.constant 0 : i32
    %c0_i32_1 = arith.constant 0 : i32
    return %c0_i32, %c0_i32_0 : i32, i32
  }
  func.func @transform_6(%arg0: i32, %arg1: i32) -> (i32, i32, i32) {
    %c0_i32 = arith.constant 0 : i32
    %c0_i32_0 = arith.constant 0 : i32
    return %arg0, %c0_i32, %arg1 : i32, i32, i32
  }
}

</mosaic_0001>

<bundles_post_ra>
// kernel: tpu_custom_call.1
= control target key start
LH: loop header
LB: loop body
LE: loop exit
PB: predicated region body
PF: predicated region fallthrough
CT: control target
= control target key end

     0   :  { %s1757_s0 = inlined_call_operand.hbm [shape: f32[2,64,256], index: 0, kind: input, shape index: {}]   ;;  %s1758_s1 = inlined_call_operand.hbm [shape: f32[2,64,256], index: 1, kind: input, shape index: {}]   ;;  %s1759_s2 = inlined_call_operand.vmem [shape: bf16[64,64], index: 2, kind: input, shape index: {}]   ;;  %s1760_s3 = inlined_call_operand.vmem [shape: f32[64,1], index: 3, kind: input, shape index: {}]   ;;  %s1761_s4 = inlined_call_operand.vmem [shape: bf16[64,64], index: 4, kind: input, shape index: {}]   ;;  %s1762_s5 = inlined_call_operand.vmem [shape: f32[64,1], index: 5, kind: input, shape index: {}]   ;;  %s1763_s6 = inlined_call_operand.hbm [shape: f32[2,64,256], index: 6, kind: output, shape index: {}]  }
   0x1   :  { %1769 = sst [smem:[#allocation12_spill]] %s1757_s0 }
   0x2   :  { %11 = vsyncpa [#allocation3], 0 }
   0x3   :  { %13 = vsyncpa [#allocation3 + $0x1], 0 }
   0x4   :  { %14 = vsyncpa [#allocation6], 0 }
   0x5   :  { %16 = vsyncpa [#allocation6 + $0x1], 0 }
   0x6   :  { %17 = vsyncpa [#allocation4], 0 }
   0x7   :  { %19 = vsyncpa [#allocation4 + $0x1], 0  ;;  %s1371_s21 = smov 0   ;;  %s1373_s22 = smov 0  }
   0x8   :  { %s1375_s23 = smov 0   ;;  %s1377_s24 = smov 0  }
   0x9   :  { %s1379_s25 = smov 0   ;;  %s1381_s26 = smov 0  }
   0xa LB: > { %s980_s27 = sadd.s32 4294967295, %s1326_s26   ;;  %s981_s28 = sadd.s32 4294967294, %s1326_s26   ;;  %s1326_s26 = sphi %s1381_s26, %s25_s26   ;;  %s1322_s25 = sphi %s1379_s25, %s1790_s25   ;;  %s1318_s24 = sphi %s1377_s24, %s1789_s24   ;;  %s1314_s23 = sphi %s1375_s23, %s1788_s23   ;;  %s1310_s22 = sphi %s1373_s22, %s1787_s22   ;;  %s1306_s21 = sphi %s1371_s21, %s1786_s21  }
   0xb   : > { %s37_s29 = sadd.s32 1, %s1322_s25  ;;  %s46_s30 = sadd.s32 1, %s1314_s23 }
   0xc   : > { %p39_p0 = scmp.ge.s32.totalorder %s37_s29, 2  ;;  %p53_p1 = scmp.ne.s32.totalorder %s1314_s23, %s1310_s22 }
   0xd   : > { %p54_p2 = scmp.eq.s32.totalorder %s1326_s26, 0  ;;  %p59_p3 = scmp.ne.s32.totalorder %s1310_s22, %s1306_s21 }
   0xe   : > { %s1792_s29 = smov (%p39_p0, %s37_s29), 0  ;;  %p60_p5 = scmp.eq.s32.totalorder %s980_s27, 0 }
   0xf   : > { %1770 = sst [smem:[#allocation11_spill]] %s1792_s29  ;;  %p1412_p4 = por %p54_p2, %p53_p1 }
  0x10   : > { %s41_s8 = ssub.s32 %s1322_s25, %s1792_s29  ;;  %p197_p6 = scmp.eq.s32.totalorder %s980_s27, 1 }
  0x11   : > { %p44_p7 = scmp.eq.s32.totalorder %s41_s8, 0  ;;  %p1418_p8 = por %p60_p5, %p59_p3 }
  0x12   : > { %p1422_p9 = por %p197_p6, %p53_p1  ;;  %p203_p10 = scmp.eq.s32.totalorder %s981_s28, 1 }
  0x13   : > { %s1772_s9 = scalar_select %p1418_p8, 1, 0 }
  0x14   : > { %s1773_s10 = scalar_select %p1422_p9, 1, 0 }
  0x15   : > { %s1427_s11 = scalar_select %p44_p7, %s1314_s23, %s46_s30  }
  0x16   : > { %p1429_p11 = por %p203_p10, %p59_p3  ;;  %p1051_p13 = scmp.lt.s32.totalorder %s1326_s26, 2 }
  0x17   : > { %s1436_s13 = sand.u32 1, %s1314_s23   ;;  %s1031_s15 = sshll.u32 %s1322_s25, 11 }
  0x18   : > { %s1774_s12 = scalar_select %p1429_p11, 1, 0 }
  0x19   : > { %s1764_s14 = sshll.u32 %s1436_s13, 7  ;;  %s1775_s0 = sld [smem:[#allocation12_spill]] }
  0x1a   : > { %s239_s19 = scalar_lea.vmem [#allocation2], %s1764_s14  ;;  %p1453_p0 = pnand %p1051_p13, %p1412_p4 }
  0x1b   : > { %s248_s20 = sshll.u32 %s239_s19, 4  ;;  %s236_s28 = scalar_lea.sflag [#allocation3], %s1436_s13  ;;  %s1449_s20 = int_to_ptr.vmem [resolvable:$true] %s248_s20 }
  0x1c   : > { %p1182_p3 = pneg %p1453_p0 }
  0x1f   : > { %s1445_s18 = scalar_lea.hbm %s1775_s0, %s1031_s15  ;;  %s1185_s7 = scalar_lea.hbm %s1775_s0, 4096 }
  0x20   : > { %s1180_s30 = scalar_lea.hbm %s1445_s18, 2048  ;;  %p1186_p4 = scmp.lt.u32.totalorder %s1445_s18, %s1775_s0 }
  0x21   : > { %p1181_p2 = scmp.ne.s32.totalorder %s1445_s18, %s1180_s30  ;;  %p1187_p7 = scmp.lt.u32.totalorder %s1185_s7, %s1180_s30 }
  0x22   : > { %p1189_p13 = scmp.lt.u32.totalorder %s1180_s30, %s1445_s18 }
  0x23   : > { %p1183_p5 = pnand %p1182_p3, %p1181_p2  ;;  %p1188_p10 = por %p1187_p7, %p1186_p4 }
  0x25   : > { %p1184_p6 = pneg %p1183_p5  ;;  %p1190_p12 = por %p1189_p13, %p1188_p10 }
  0x27   : > { %p1191_p1 = pnand %p1190_p12, %p1184_p6 }
  0x29   : > { %1194 = shalt.err (!%p1191_p1)
}
  0x2a   : > { %s1195_s14 = scalar_lea.vmem %s1449_s20, 2048  ;;  %s1328_s8 = smov [#allocation2]  }
  0x2b   : > { %p1196_p2 = scmp.ne.s32.totalorder %s1449_s20, %s1195_s14  ;;  %s1200_s16 = sshll.u32 %s1328_s8, 4  ;;  %s1201_s16 = int_to_ptr.vmem [resolvable:$false] %s1200_s16 }
  0x2c   : > { %s1202_s17 = scalar_lea.vmem %s1201_s16, 4096  ;;  %p1203_p9 = scmp.lt.s32.totalorder %s1449_s20, %s1201_s16 }
  0x2d   : > { %p1198_p5 = pnand %p1196_p2, %p1182_p3  ;;  %p1204_p4 = scmp.lt.s32.totalorder %s1202_s17, %s1195_s14 }
  0x2f   : > { %p1199_p11 = pneg %p1198_p5  ;;  %p1205_p7 = por %p1204_p4, %p1203_p9 }
  0x31   : > { %p1206_p10 = pnand %p1205_p7, %p1199_p11 }
  0x33   : > { %1209 = shalt.err (!%p1206_p10)
}
  0x34   : > { %s1767_s30 = smov 256   ;;  %s1330_s7 = smov 16  }
  0x35   : > { %1043 = dma.hbm_to_vmem [thread:$0]  (!%p1453_p0), %s1445_s18, 2048, %s1449_s20, %s236_s28, %s1767_s30, %s1767_s30, %s1330_s7  }
  0x36   : > { %p279_p9 = scmp.lt.s32.totalorder %s1326_s26, 3  ;;  %s1495_s8 = scalar_lea.hbm %s1758_s1, %s1031_s15 }
  0x37   : > { %p1777_p11 = scmp.ge.s32.totalorder %s1326_s26, 1  ;;  %s1779_s17 = sshll.u32 %s1436_s13, 7 }
  0x38   : > { %s262_s0 = scalar_lea.vmem [#allocation5], %s1779_s17  ;;  %s259_s18 = scalar_lea.sflag [#allocation6], %s1436_s13 }
  0x39   : > { %p1499_p12 = pnand %p1777_p11, %p279_p9  ;;  %s271_s29 = sshll.u32 %s262_s0, 4  ;;  %s1505_s29 = int_to_ptr.vmem [resolvable:$true] %s271_s29 }
  0x3a   : > { %s1210_s20 = scalar_lea.hbm %s1495_s8, 2048  ;;  %s1215_s14 = scalar_lea.hbm %s1758_s1, 4096 }
  0x3b   : > { %p1211_p1 = scmp.ne.s32.totalorder %s1495_s8, %s1210_s20  ;;  %p1216_p2 = scmp.lt.u32.totalorder %s1495_s8, %s1758_s1 }
  0x3c   : > { %p1217_p5 = scmp.lt.u32.totalorder %s1215_s14, %s1210_s20  ;;  %p1219_p7 = scmp.lt.u32.totalorder %s1210_s20, %s1495_s8 }
  0x3d   : > { %p1213_p6 = pnand %p1211_p1, %p1182_p3 }
  0x3e   : > { %p1218_p4 = por %p1217_p5, %p1216_p2 }
  0x3f   : > { %p1214_p13 = pneg %p1213_p6 }
  0x40   : > { %p1220_p10 = por %p1219_p7, %p1218_p4 }
  0x42   : > { %p1221_p9 = pnand %p1220_p10, %p1214_p13 }
  0x44   : > { %1224 = shalt.err (!%p1221_p9)
}
  0x45   : > { %s1225_s0 = scalar_lea.vmem %s1505_s29, 2048  ;;  %s1331_s17 = smov [#allocation5]  }
  0x46   : > { %p1226_p11 = scmp.ne.s32.totalorder %s1505_s29, %s1225_s0  ;;  %s1230_s15 = sshll.u32 %s1331_s17, 4  ;;  %s1231_s15 = int_to_ptr.vmem [resolvable:$false] %s1230_s15 }
  0x47   : > { %s1232_s30 = scalar_lea.vmem %s1231_s15, 4096  ;;  %p1233_p8 = scmp.lt.s32.totalorder %s1505_s29, %s1231_s15 }
  0x48   : > { %p1228_p1 = pnand %p1226_p11, %p1182_p3  ;;  %p1234_p2 = scmp.lt.s32.totalorder %s1232_s30, %s1225_s0 }
  0x4a   : > { %p1229_p6 = pneg %p1228_p1  ;;  %p1235_p5 = por %p1234_p2, %p1233_p8 }
  0x4c   : > { %p1236_p4 = pnand %p1235_p5, %p1229_p6 }
  0x4e   : > { %1239 = shalt.err (!%p1236_p4)
}
  0x4f   : > { %s1780_s20 = smov 256   ;;  %283 = sbr.rel (%p1499_p12) target bundleno = 642 (0x282), region = 44 }
  0x50   : > { %1046 = dma.hbm_to_vmem [thread:$0]  (!%p1453_p0), %s1495_s8, 2048, %s1505_s29, %s259_s18, %s1780_s20, %s1780_s20, %s1330_s7  }
  0x51   : > { %s1539_s28 = sand.u32 (!%p1499_p12), 1, %s1310_s22   ;;  %p1781_p8 = scmp.ne.s32.totalorder (!%p1499_p12), %s1772_s9, 0 }
  0x52   : > { %s1542_s14 = sshll.u32 (!%p1499_p12), %s1539_s28, 7  ;;  %s286_s27 = scalar_lea.sflag (!%p1499_p12), [#allocation3], %s1539_s28 }
  0x53   : > { %s1546_s19 = scalar_lea.vmem (!%p1499_p12), [#allocation2], %s1542_s14 }
  0x56   : > { %1293 = dma.done.wait (%p1781_p8), %s286_s27, 2048  }
  0x57   : > { %1295 = vsyncadd (%p1781_p8), %s286_s27, 4294965248  ;;  %s295_s29 = scalar_lea.sflag [#allocation6], %s1539_s28  ;;  %s1554_s13 = scalar_lea.vmem [#allocation5], %s1542_s14 }
  0x58   : > { %1297 = dma.done.wait (%p1781_p8), %s295_s29, 2048  }
  0x59   : > { %1299 = vsyncadd (%p1781_p8), %s295_s29, 4294965248  ;;  %v1332_v0 = vmov 0   ;;  %v337_v1 = vld [vmem:[%s1554_s13 + $0x8] sm:$0xff]  ;;  %v339_v2 = vld [vmem:[%s1554_s13 + $0x18] sm:$0xff]  ;;  %vm436_vm0 = vcmask 523264   ;;  %s1671_s20 = scalar_lea.vmem [#allocation7], %s1542_s14 }
  0x5a   : > { %481 = vmatprep.mubr.bf16.mxu0 %v1332_v0  ;;  %1106 = vset.pattern.permute.xlu0 %v1332_v0  ;;  %v336_v3 = vld [vmem:[%s1554_s13] sm:$0xff]  ;;  %v353_v4 = vpack.c.bf16 %v339_v2, %v337_v1  ;;  %v338_v5 = vld [vmem:[%s1554_s13 + $0x10] sm:$0xff]  ;;  %v341_v6 = vld [vmem:[%s1554_s13 + $0x28] sm:$0xff]  ;;  %s1033_s14 = sshll.u32 %s1318_s24, 11  ;;  %s867_s27 = sshll.u32 %s1671_s20, 4  ;;  %s1705_s27 = int_to_ptr.vmem [resolvable:$true] %s867_s27 }
  0x5b   : > { %1107 = vset.pattern.permute.xlu1 %v1332_v0  ;;  %666 = vmatprep.mubr.bf16.mxu1 %v1332_v0  ;;  %v343_v7 = vld [vmem:[%s1554_s13 + $0x38] sm:$0xff]  ;;  %v352_v8 = vpack.c.bf16 %v338_v5, %v336_v3  ;;  %v340_v10 = vld [vmem:[%s1554_s13 + $0x20] sm:$0xff]  ;;  %v342_v11 = vld [vmem:[%s1554_s13 + $0x30] sm:$0xff]  ;;  %s1703_s9 = scalar_lea.hbm %s1763_s6, %s1033_s14  ;;  %s852_s24 = scalar_lea.sflag [#allocation4], %s1539_s28 }
  0x5c   : > { %v355_v9 = vpack.c.bf16 %v343_v7, %v341_v6  ;;  %v345_v12 = vld [vmem:[%s1554_s13 + $0x48] sm:$0xff]  ;;  %449 = vmatprep.subr.bf16.mxu0 %v353_v4  ;;  %v347_v13 = vld [vmem:[%s1554_s13 + $0x58] sm:$0xff]  ;;  %v354_v14 = vpack.c.bf16 %v342_v11, %v340_v10  ;;  %v344_v15 = vld [vmem:[%s1554_s13 + $0x40] sm:$0xff]  ;;  %p1782_p3 = scmp.ne.s32.totalorder %s1773_s10, 0  ;;  %s1333_s7 = smov [#allocation7]  }
  0x5d   : > { %450 = vmatpush1.bf16.msra.mxu0 %v352_v8  ;;  %v346_v16 = vld [vmem:[%s1554_s13 + $0x50] sm:$0xff]  ;;  %v357_v17 = vpack.c.bf16 %v347_v13, %v345_v12  ;;  %v349_v18 = vld [vmem:[%s1554_s13 + $0x68] sm:$0xff]  ;;  %v351_v19 = vld [vmem:[%s1554_s13 + $0x78] sm:$0xff]  ;;  %s1244_s8 = sshll.u32 %s1333_s7, 4  ;;  %s1245_s8 = int_to_ptr.vmem [resolvable:$false] %s1244_s8 }
  0x5e   : > { %451 = vmatprep.subr.bf16.mxu0 %v355_v9  ;;  %v356_v20 = vpack.c.bf16 %v346_v16, %v344_v15  ;;  %v348_v21 = vld [vmem:[%s1554_s13 + $0x60] sm:$0xff]  ;;  %v359_v22 = vpack.c.bf16 %v351_v19, %v349_v18  ;;  %v350_v23 = vld [vmem:[%s1554_s13 + $0x70] sm:$0xff]  ;;  %v369_v26 = vld [vmem:[%s1760_s3 + $0x8] sm:$0xff]  ;;  %s1246_s16 = scalar_lea.vmem %s1245_s8, 4096  ;;  %p1247_p7 = scmp.lt.s32.totalorder %s1705_s27, %s1245_s8 }
  0x5f   : > { %v368_v24 = vld [vmem:[%s1760_s3] sm:$0xff]  ;;  %v370_v25 = vld [vmem:[%s1760_s3 + $0x10] sm:$0xff]  ;;  %v371_v27 = vld [vmem:[%s1760_s3 + $0x18] sm:$0xff]  ;;  %v358_v28 = vpack.c.bf16 %v350_v23, %v348_v21 }
  0x60   : > { %378 = vperm.xlu0 %1106, %v368_v24   ;;  %388 = vperm.xlu1 %1107, %v370_v25   ;;  %v1108_v29 = vld [vmem:[%s1759_s2] sm:$0xff]   ;;  %v373_v31 = vld [vmem:[%s1760_s3 + $0x28] sm:$0xff]  ;;  %v374_v32 = vld [vmem:[%s1760_s3 + $0x30] sm:$0xff] }
  0x61   : > { %452 = vmatpush1.bf16.msra.mxu0 %v354_v14  ;;  %v372_v30 = vld [vmem:[%s1760_s3 + $0x20] sm:$0xff]  ;;  %v375_v33 = vld [vmem:[%s1760_s3 + $0x38] sm:$0xff]  ;;  %v1109_v34 = vld [vmem:[%s1759_s2 + $0x8] sm:$0xff]  }
  0x62   : > { %453 = vmatprep.subr.bf16.mxu0 %v357_v17  ;;  %v554_v35 = vld [vmem:[%s1762_s5] sm:$0xff]  ;;  %v555_v36 = vld [vmem:[%s1762_s5 + $0x8] sm:$0xff]  ;;  %v556_v37 = vld [vmem:[%s1762_s5 + $0x10] sm:$0xff] }
  0x63   : > { %v557_v38 = vld [vmem:[%s1762_s5 + $0x18] sm:$0xff]  ;;  %v1110_v39 = vld [vmem:[%s1759_s2 + $0x10] sm:$0xff]   ;;  %v558_v40 = vld [vmem:[%s1762_s5 + $0x20] sm:$0xff] }
  0x64   : > { %383 = vperm.xlu0 %1106, %v369_v26   ;;  %393 = vperm.xlu1 %1107, %v371_v27   ;;  %v559_v41 = vld [vmem:[%s1762_s5 + $0x28] sm:$0xff]  ;;  %v560_v42 = vld [vmem:[%s1762_s5 + $0x30] sm:$0xff]  ;;  %v561_v43 = vld [vmem:[%s1762_s5 + $0x38] sm:$0xff] }
  0x65   : > { %454 = vmatpush1.bf16.msra.mxu0 %v356_v20  ;;  %v1111_v44 = vld [vmem:[%s1759_s2 + $0x18] sm:$0xff]  }
  0x66   : > { %455 = vmatprep.subr.bf16.mxu0 %v359_v22 }
  0x68   : > { %398 = vperm.xlu0 %1106, %v372_v30   ;;  %403 = vperm.xlu1 %1107, %v373_v31  }
  0x69   : > { %456 = vmatpush1.bf16.msra.mxu0 %v358_v28 }
  0x6c   : > { %998 = vmatmul.mubr.msk.bf16.vlgmr.msra.gmra.mrb[0].mxu0 %vm436_vm0, %v1108_v29  ;;  %408 = vperm.xlu0 %1106, %v374_v32  }
  0x6d   : > { %491 = vmatprep.mubr.bf16.mxu0 %v1332_v0  ;;  %413 = vperm.xlu1 %1107, %v375_v33  }
  0x70   : > { %564 = vperm.xlu0 %1106, %v554_v35  }
  0x71   : > { %569 = vperm.xlu1 %1107, %v555_v36  }
  0x74   : > { %999 = vmatmul.mubr.msk.bf16.gmra.mrb[4].mxu0 %vm436_vm0, %v1109_v34  ;;  %574 = vperm.xlu0 %1106, %v556_v37  }
  0x75   : > { %501 = vmatprep.mubr.bf16.mxu0 %v1332_v0  ;;  %579 = vperm.xlu1 %1107, %v557_v38  }
  0x78   : > { %584 = vperm.xlu0 %1106, %v558_v40  }
  0x79   : > { %589 = vperm.xlu1 %1107, %v559_v41  }
  0x7c   : > { %1000 = vmatmul.mubr.msk.bf16.gmra.mrb[8].mxu0 %vm436_vm0, %v1110_v39  ;;  %594 = vperm.xlu0 %1106, %v560_v42  }
  0x7d   : > { %511 = vmatprep.mubr.bf16.mxu0 %v1332_v0  ;;  %599 = vperm.xlu1 %1107, %v561_v43  }
  0x84   : > { %1001 = vmatmul.mubr.msk.bf16.gmra.mrb[12].mxu0 %vm436_vm0, %v1111_v44 }
  0xdf   : > { %v379_v45 = vpop.permute.xlu0 %378  ;;  %v389_v54 = vpop.permute.xlu1 %388 }
  0xe3   : > { %v384_v49 = vpop.permute.xlu0 %383  ;;  %v394_v2 = vpop.permute.xlu1 %393 }
  0xe7   : > { %v399_v13 = vpop.permute.xlu0 %398  ;;  %v404_v18 = vpop.permute.xlu1 %403 }
  0xeb   : > { %v409_v29 = vpop.permute.xlu0 %408 }
  0xec   : > { %v414_v34 = vpop.permute.xlu1 %413 }
 0x13f   : > { %v483_v46 = vpop.f32.mrb[0].mxu0 }
 0x140   : > { %v484_v47 = vadd.f32 %v483_v46, %v379_v45  ;;  %v485_v48 = vpop.f32.mrb[1].mxu0  ;;  %v1112_v46 = vld [vmem:[%s1761_s4] sm:$0xff]  }
 0x141   : > { %v486_v50 = vadd.f32 %v485_v48, %v379_v45  ;;  %v487_v51 = vpop.f32.mrb[2].mxu0  ;;  %v1114_v48 = vld [vmem:[%s1761_s4 + $0x10] sm:$0xff]  }
 0x142   : > { %v488_v52 = vadd.f32 %v487_v51, %v384_v49  ;;  %v489_v53 = vpop.f32.mrb[3].mxu0  ;;  %v522_v56 = vmax.f32 %v484_v47, 0.0  ;;  %v1113_v47 = vld [vmem:[%s1761_s4 + $0x8] sm:$0xff]  }
 0x143   : > { %v490_v55 = vadd.f32 %v489_v53, %v384_v49  ;;  %v523_v58 = vmax.f32 %v486_v50, 0.0  ;;  %v1115_v49 = vld [vmem:[%s1761_s4 + $0x18] sm:$0xff]   ;;  %v565_v50 = vpop.permute.xlu0 %564 }
 0x144   : > { %v524_v57 = vmax.f32 %v488_v52, 0.0 }
 0x145   : > { %v525_v59 = vmax.f32 %v490_v55, 0.0 }
 0x146   : > { %v546_v60 = vpack.c.bf16 %v524_v57, %v522_v56 }
 0x147   : > { %v493_v61 = vpop.f32.mrb[4].mxu0  ;;  %v547_v62 = vpack.c.bf16 %v525_v59, %v523_v58 }
 0x148   : > { %v494_v63 = vadd.f32 %v493_v61, %v389_v54  ;;  %v495_v1 = vpop.f32.mrb[5].mxu0 }
 0x149   : > { %v496_v3 = vadd.f32 %v495_v1, %v389_v54  ;;  %v497_v4 = vpop.f32.mrb[6].mxu0  ;;  %634 = vmatprep.subr.bf16.mxu1 %v547_v62  ;;  %v570_v54 = vpop.permute.xlu1 %569 }
 0x14a   : > { %v498_v5 = vadd.f32 %v497_v4, %v394_v2  ;;  %v499_v6 = vpop.f32.mrb[7].mxu0  ;;  %635 = vmatpush1.bf16.msra.mxu1 %v546_v60  ;;  %v526_v8 = vmax.f32 %v494_v63, 0.0  ;;  %v575_v63 = vpop.permute.xlu0 %574 }
 0x14b   : > { %v500_v7 = vadd.f32 %v499_v6, %v394_v2  ;;  %v527_v10 = vmax.f32 %v496_v3, 0.0 }
 0x14c   : > { %v528_v9 = vmax.f32 %v498_v5, 0.0 }
 0x14d   : > { %v529_v11 = vmax.f32 %v500_v7, 0.0  ;;  %v580_v4 = vpop.permute.xlu1 %579 }
 0x14e   : > { %v548_v12 = vpack.c.bf16 %v528_v9, %v526_v8 }
 0x14f   : > { %v549_v14 = vpack.c.bf16 %v529_v11, %v527_v10  ;;  %v503_v15 = vpop.f32.mrb[8].mxu0 }
 0x150   : > { %v504_v16 = vadd.f32 %v503_v15, %v399_v13  ;;  %v505_v17 = vpop.f32.mrb[9].mxu0 }
 0x151   : > { %v506_v19 = vadd.f32 %v505_v17, %v399_v13  ;;  %v507_v20 = vpop.f32.mrb[10].mxu0  ;;  %636 = vmatprep.subr.bf16.mxu1 %v549_v14 }
 0x152   : > { %v508_v21 = vadd.f32 %v507_v20, %v404_v18  ;;  %v509_v22 = vpop.f32.mrb[11].mxu0  ;;  %637 = vmatpush1.bf16.msra.mxu1 %v548_v12  ;;  %v530_v24 = vmax.f32 %v504_v16, 0.0  ;;  %v585_v16 = vpop.permute.xlu0 %584 }
 0x153   : > { %v510_v23 = vadd.f32 %v509_v22, %v404_v18  ;;  %v531_v26 = vmax.f32 %v506_v19, 0.0 }
 0x154   : > { %v532_v25 = vmax.f32 %v508_v21, 0.0 }
 0x155   : > { %v533_v27 = vmax.f32 %v510_v23, 0.0 }
 0x156   : > { %v550_v28 = vpack.c.bf16 %v532_v25, %v530_v24  ;;  %v590_v24 = vpop.permute.xlu1 %589 }
 0x157   : > { %v551_v30 = vpack.c.bf16 %v533_v27, %v531_v26  ;;  %v513_v31 = vpop.f32.mrb[12].mxu0 }
 0x158   : > { %v514_v32 = vadd.f32 %v513_v31, %v409_v29  ;;  %v515_v33 = vpop.f32.mrb[13].mxu0 }
 0x159   : > { %v516_v35 = vadd.f32 %v515_v33, %v409_v29  ;;  %v517_v36 = vpop.f32.mrb[14].mxu0  ;;  %638 = vmatprep.subr.bf16.mxu1 %v551_v30 }
 0x15a   : > { %v518_v37 = vadd.f32 %v517_v36, %v414_v34  ;;  %v519_v38 = vpop.f32.mrb[15].mxu0  ;;  %639 = vmatpush1.bf16.msra.mxu1 %v550_v28  ;;  %v534_v40 = vmax.f32 %v514_v32, 0.0 }
 0x15b   : > { %v520_v39 = vadd.f32 %v519_v38, %v414_v34  ;;  %v535_v42 = vmax.f32 %v516_v35, 0.0  ;;  %v595_v38 = vpop.permute.xlu0 %594 }
 0x15c   : > { %v536_v41 = vmax.f32 %v518_v37, 0.0 }
 0x15d   : > { %v537_v43 = vmax.f32 %v520_v39, 0.0 }
 0x15e   : > { %v552_v44 = vpack.c.bf16 %v536_v41, %v534_v40 }
 0x15f   : > { %v553_v45 = vpack.c.bf16 %v537_v43, %v535_v42 }
 0x161   : > { %640 = vmatprep.subr.bf16.mxu1 %v553_v45 }
 0x162   : > { %641 = vmatpush1.bf16.msra.mxu1 %v552_v44 }
 0x165   : > { %1006 = vmatmul.mubr.msk.bf16.vlgmr.msra.gmra.mrb[0].mxu1 %vm436_vm0, %v1112_v46  ;;  %v600_v46 = vpop.permute.xlu1 %599 }
 0x166   : > { %676 = vmatprep.mubr.bf16.mxu1 %v1332_v0 }
 0x16d   : > { %1007 = vmatmul.mubr.msk.bf16.gmra.mrb[4].mxu1 %vm436_vm0, %v1113_v47  ;;  %v803_v47 = vld [vmem:[%s1546_s19] sm:$0xff] }
 0x16e   : > { %686 = vmatprep.mubr.bf16.mxu1 %v1332_v0 }
 0x175   : > { %1008 = vmatmul.mubr.msk.bf16.gmra.mrb[8].mxu1 %vm436_vm0, %v1114_v48 }
 0x176   : > { %696 = vmatprep.mubr.bf16.mxu1 %v1332_v0 }
 0x17d   : > { %1009 = vmatmul.mubr.msk.bf16.gmra.mrb[12].mxu1 %vm436_vm0, %v1115_v49 }
 0x238   : > { %v668_v51 = vpop.f32.mrb[0].mxu1 }
 0x239   : > { %v669_v52 = vadd.f32 %v668_v51, %v565_v50  ;;  %v670_v53 = vpop.f32.mrb[1].mxu1  ;;  %v804_v51 = vld [vmem:[%s1546_s19 + $0x8] sm:$0xff] }
 0x23a   : > { %v671_v55 = vadd.f32 %v670_v53, %v565_v50  ;;  %v672_v56 = vpop.f32.mrb[2].mxu1 }
 0x23b   : > { %v1010_v57 = vmul.f32 -1.442695, %v669_v52  ;;  %v673_v58 = vadd.f32 %v672_v56, %v570_v54  ;;  %v674_v59 = vpop.f32.mrb[3].mxu1 }
 0x23c   : > { %v1011_v60 = vmul.f32 -1.442695, %v671_v55  ;;  %v675_v61 = vadd.f32 %v674_v59, %v570_v54 }
 0x23d   : > { %1116 = vpow2.f32 %v1010_v57  ;;  %v1012_v0 = vmul.f32 -1.442695, %v673_v58  ;;  %v805_v57 = vld [vmem:[%s1546_s19 + $0x10] sm:$0xff] }
 0x23e   : > { %1118 = vpow2.f32 %v1011_v60  ;;  %v1013_v62 = vmul.f32 -1.442695, %v675_v61 }
 0x23f   : > { %1120 = vpow2.f32 %v1012_v0  ;;  %v806_v0 = vld [vmem:[%s1546_s19 + $0x18] sm:$0xff] }
 0x240   : > { %1122 = vpow2.f32 %v1013_v62  ;;  %v678_v1 = vpop.f32.mrb[4].mxu1 }
 0x241   : > { %v679_v2 = vadd.f32 %v678_v1, %v575_v63  ;;  %v680_v3 = vpop.f32.mrb[5].mxu1 }
 0x242   : > { %v681_v5 = vadd.f32 %v680_v3, %v575_v63  ;;  %v682_v6 = vpop.f32.mrb[6].mxu1 }
 0x243   : > { %v1014_v7 = vmul.f32 -1.442695, %v679_v2  ;;  %v683_v8 = vadd.f32 %v682_v6, %v580_v4  ;;  %v684_v9 = vpop.f32.mrb[7].mxu1 }
 0x244   : > { %v1015_v10 = vmul.f32 -1.442695, %v681_v5  ;;  %v685_v11 = vadd.f32 %v684_v9, %v580_v4 }
 0x245   : > { %1124 = vpow2.f32 %v1014_v7  ;;  %v1016_v12 = vmul.f32 -1.442695, %v683_v8 }
 0x246   : > { %1126 = vpow2.f32 %v1015_v10  ;;  %v1017_v13 = vmul.f32 -1.442695, %v685_v11  ;;  %v807_v10 = vld [vmem:[%s1546_s19 + $0x20] sm:$0xff] }
 0x247   : > { %v1117_v14 = vpop.eup %1116  ;;  %1128 = vpow2.f32 %v1016_v12 }
 0x248   : > { %v1119_v15 = vpop.eup %1118  ;;  %v755_v17 = vadd.f32 1.0, %v1117_v14  ;;  %1130 = vpow2.f32 %v1017_v13  ;;  %v688_v18 = vpop.f32.mrb[8].mxu1  ;;  %v808_v13 = vld [vmem:[%s1546_s19 + $0x28] sm:$0xff] }
 0x249   : > { %v1121_v19 = vpop.eup %1120  ;;  %v756_v20 = vadd.f32 1.0, %v1119_v15  ;;  %v689_v21 = vadd.f32 %v688_v18, %v585_v16  ;;  %v690_v22 = vpop.f32.mrb[9].mxu1 }
 0x24a   : > { %v1123_v23 = vpop.eup %1122  ;;  %1132 = vrcp.f32 %v755_v17  ;;  %v757_v25 = vadd.f32 1.0, %v1121_v19  ;;  %v691_v26 = vadd.f32 %v690_v22, %v585_v16  ;;  %v692_v27 = vpop.f32.mrb[10].mxu1  ;;  %v809_v16 = vld [vmem:[%s1546_s19 + $0x30] sm:$0xff] }
 0x24b   : > { %1134 = vrcp.f32 %v756_v20  ;;  %v758_v28 = vadd.f32 1.0, %v1123_v23  ;;  %v1018_v29 = vmul.f32 -1.442695, %v689_v21  ;;  %v693_v30 = vadd.f32 %v692_v27, %v590_v24  ;;  %v694_v31 = vpop.f32.mrb[11].mxu1  ;;  %v810_v20 = vld [vmem:[%s1546_s19 + $0x38] sm:$0xff] }
 0x24c   : > { %1136 = vrcp.f32 %v757_v25  ;;  %v1019_v32 = vmul.f32 -1.442695, %v691_v26  ;;  %v695_v33 = vadd.f32 %v694_v31, %v590_v24 }
 0x24d   : > { %1138 = vrcp.f32 %v758_v28  ;;  %v1020_v34 = vmul.f32 -1.442695, %v693_v30 }
 0x24e   : > { %1140 = vpow2.f32 %v1018_v29  ;;  %v1021_v35 = vmul.f32 -1.442695, %v695_v33 }
 0x24f   : > { %v1125_v36 = vpop.eup %1124  ;;  %1142 = vpow2.f32 %v1019_v32  ;;  %v811_v32 = vld [vmem:[%s1546_s19 + $0x40] sm:$0xff] }
 0x250   : > { %v1127_v37 = vpop.eup %1126  ;;  %v759_v39 = vadd.f32 1.0, %v1125_v36  ;;  %1144 = vpow2.f32 %v1020_v34  ;;  %v698_v40 = vpop.f32.mrb[12].mxu1  ;;  %v812_v34 = vld [vmem:[%s1546_s19 + $0x48] sm:$0xff] }
 0x251   : > { %v1129_v41 = vpop.eup %1128  ;;  %v760_v42 = vadd.f32 1.0, %v1127_v37  ;;  %1146 = vpow2.f32 %v1021_v35  ;;  %v699_v43 = vadd.f32 %v698_v40, %v595_v38  ;;  %v700_v44 = vpop.f32.mrb[13].mxu1  ;;  %v813_v37 = vld [vmem:[%s1546_s19 + $0x50] sm:$0xff]  ;;  %v814_v40 = vld [vmem:[%s1546_s19 + $0x58] sm:$0xff] }
 0x252   : > { %v1131_v45 = vpop.eup %1130  ;;  %1148 = vrcp.f32 %v759_v39  ;;  %v761_v48 = vadd.f32 1.0, %v1129_v41  ;;  %v701_v49 = vadd.f32 %v700_v44, %v595_v38  ;;  %v702_v50 = vpop.f32.mrb[14].mxu1 }
 0x253   : > { %1150 = vrcp.f32 %v760_v42  ;;  %v762_v52 = vadd.f32 1.0, %v1131_v45  ;;  %v1022_v53 = vmul.f32 -1.442695, %v699_v43  ;;  %v703_v54 = vadd.f32 %v702_v50, %v600_v46  ;;  %v704_v55 = vpop.f32.mrb[15].mxu1 }
 0x254   : > { %v1133_v56 = vpop.eup %1132  ;;  %1152 = vrcp.f32 %v761_v48  ;;  %v1023_v58 = vmul.f32 -1.442695, %v701_v49  ;;  %v705_v59 = vadd.f32 %v704_v55, %v600_v46  ;;  %v815_v46 = vld [vmem:[%s1546_s19 + $0x60] sm:$0xff]  ;;  %v817_v49 = vld [vmem:[%s1546_s19 + $0x70] sm:$0xff] }
 0x255   : > { %v1135_v60 = vpop.eup %1134  ;;  %v819_v61 = vmul.f32 %v1133_v56, %v803_v47  ;;  %1154 = vrcp.f32 %v762_v52  ;;  %v1024_v62 = vmul.f32 -1.442695, %v703_v54  ;;  %v816_v47 = vld [vmem:[%s1546_s19 + $0x68] sm:$0xff]  ;;  %v818_v52 = vld [vmem:[%s1546_s19 + $0x78] sm:$0xff]  ;;  %s1240_s19 = scalar_lea.vmem %s1705_s27, 2048 }
 0x256   : > { %v1137_v63 = vpop.eup %1136  ;;  %v820_v1 = vmul.f32 %v1135_v60, %v804_v51  ;;  %1156 = vpow2.f32 %v1022_v53  ;;  %v1025_v2 = vmul.f32 -1.442695, %v705_v59  ;;  %p1241_p0 = scmp.ne.s32.totalorder %s1705_s27, %s1240_s19  ;;  %p1248_p10 = scmp.lt.s32.totalorder %s1246_s16, %s1240_s19 }
 0x257   : > { %v1139_v3 = vpop.eup %1138  ;;  %835 = vst [vmem:[%s1671_s20] sm:$0xff] %v819_v61  ;;  %v821_v4 = vmul.f32 %v1137_v63, %v805_v57  ;;  %1158 = vpow2.f32 %v1023_v58 }
 0x258   : > { %v1141_v5 = vpop.eup %1140  ;;  %836 = vst [vmem:[%s1671_s20 + $0x8] sm:$0xff] %v820_v1  ;;  %v822_v6 = vmul.f32 %v1139_v3, %v806_v0  ;;  %1160 = vpow2.f32 %v1024_v62  ;;  %p1242_p12 = pnand %p1241_p0, %p1782_p3  ;;  %p1249_p9 = por %p1248_p10, %p1247_p7 }
 0x259   : > { %v1143_v7 = vpop.eup %1142  ;;  %837 = vst [vmem:[%s1671_s20 + $0x10] sm:$0xff] %v821_v4  ;;  %v763_v8 = vadd.f32 1.0, %v1141_v5  ;;  %1162 = vpow2.f32 %v1025_v2 }
 0x25a   : > { %v1145_v9 = vpop.eup %1144  ;;  %838 = vst [vmem:[%s1671_s20 + $0x18] sm:$0xff] %v822_v6  ;;  %v764_v11 = vadd.f32 1.0, %v1143_v7  ;;  %p1243_p13 = pneg %p1242_p12 }
 0x25b   : > { %v1147_v12 = vpop.eup %1146  ;;  %1164 = vrcp.f32 %v763_v8  ;;  %v765_v14 = vadd.f32 1.0, %v1145_v9 }
 0x25c   : > { %v1149_v15 = vpop.eup %1148  ;;  %1166 = vrcp.f32 %v764_v11  ;;  %v766_v17 = vadd.f32 1.0, %v1147_v12  ;;  %p1250_p11 = pnand %p1249_p9, %p1243_p13 }
 0x25d   : > { %v1151_v18 = vpop.eup %1150  ;;  %v823_v19 = vmul.f32 %v1149_v15, %v807_v10  ;;  %1168 = vrcp.f32 %v765_v14 }
 0x25e   : > { %v1153_v21 = vpop.eup %1152  ;;  %v824_v22 = vmul.f32 %v1151_v18, %v808_v13  ;;  %1170 = vrcp.f32 %v766_v17 }
 0x25f   : > { %v1155_v23 = vpop.eup %1154  ;;  %839 = vst [vmem:[%s1671_s20 + $0x20] sm:$0xff] %v823_v19  ;;  %v825_v24 = vmul.f32 %v1153_v21, %v809_v16 }
 0x260   : > { %v1157_v25 = vpop.eup %1156  ;;  %840 = vst [vmem:[%s1671_s20 + $0x28] sm:$0xff] %v824_v22  ;;  %v826_v26 = vmul.f32 %v1155_v23, %v810_v20 }
 0x261   : > { %v1159_v27 = vpop.eup %1158  ;;  %841 = vst [vmem:[%s1671_s20 + $0x30] sm:$0xff] %v825_v24  ;;  %v767_v28 = vadd.f32 1.0, %v1157_v25 }
 0x262   : > { %v1161_v29 = vpop.eup %1160  ;;  %842 = vst [vmem:[%s1671_s20 + $0x38] sm:$0xff] %v826_v26  ;;  %v768_v30 = vadd.f32 1.0, %v1159_v27 }
 0x263   : > { %v1163_v31 = vpop.eup %1162  ;;  %1172 = vrcp.f32 %v767_v28  ;;  %v769_v33 = vadd.f32 1.0, %v1161_v29 }
 0x264   : > { %1174 = vrcp.f32 %v768_v30  ;;  %v770_v35 = vadd.f32 1.0, %v1163_v31 }
 0x265   : > { %v1165_v36 = vpop.eup %1164  ;;  %1176 = vrcp.f32 %v769_v33 }
 0x266   : > { %v1167_v38 = vpop.eup %1166  ;;  %v827_v39 = vmul.f32 %v1165_v36, %v811_v32  ;;  %1178 = vrcp.f32 %v770_v35 }
 0x267   : > { %v1169_v41 = vpop.eup %1168  ;;  %v828_v42 = vmul.f32 %v1167_v38, %v812_v34 }
 0x268   : > { %v1171_v43 = vpop.eup %1170  ;;  %843 = vst [vmem:[%s1671_s20 + $0x40] sm:$0xff] %v827_v39  ;;  %v829_v44 = vmul.f32 %v1169_v41, %v813_v37 }
 0x269   : > { %844 = vst [vmem:[%s1671_s20 + $0x48] sm:$0xff] %v828_v42  ;;  %v830_v45 = vmul.f32 %v1171_v43, %v814_v40 }
 0x26a   : > { %845 = vst [vmem:[%s1671_s20 + $0x50] sm:$0xff] %v829_v44 }
 0x26b   : > { %846 = vst [vmem:[%s1671_s20 + $0x58] sm:$0xff] %v830_v45 }
 0x26d   : > { %v1173_v48 = vpop.eup %1172 }
 0x26e   : > { %v1175_v50 = vpop.eup %1174  ;;  %v831_v51 = vmul.f32 %v1173_v48, %v815_v46 }
 0x26f   : > { %v1177_v53 = vpop.eup %1176  ;;  %v832_v54 = vmul.f32 %v1175_v50, %v816_v47 }
 0x270   : > { %v1179_v55 = vpop.eup %1178  ;;  %847 = vst [vmem:[%s1671_s20 + $0x60] sm:$0xff] %v831_v51  ;;  %v833_v56 = vmul.f32 %v1177_v53, %v817_v49 }
 0x271   : > { %848 = vst [vmem:[%s1671_s20 + $0x68] sm:$0xff] %v832_v54  ;;  %v834_v57 = vmul.f32 %v1179_v55, %v818_v52 }
 0x272   : > { %849 = vst [vmem:[%s1671_s20 + $0x70] sm:$0xff] %v833_v56 }
 0x273   : > { %850 = vst [vmem:[%s1671_s20 + $0x78] sm:$0xff] %v834_v57 }
 0x274   : > { %1253 = shalt.err (!%p1250_p11)
}
 0x275   : > { %s1254_s18 = scalar_lea.hbm %s1703_s9, 2048  ;;  %s1258_s15 = scalar_lea.hbm %s1763_s6, 4096 }
 0x276   : > { %p1255_p1 = scmp.ne.s32.totalorder %s1703_s9, %s1254_s18  ;;  %p1259_p5 = scmp.lt.u32.totalorder %s1703_s9, %s1763_s6 }
 0x277   : > { %p1260_p4 = scmp.lt.u32.totalorder %s1258_s15, %s1254_s18  ;;  %p1262_p0 = scmp.lt.u32.totalorder %s1254_s18, %s1703_s9 }
 0x278   : > { %p1256_p6 = pnand %p1255_p1, %p1782_p3 }
 0x279   : > { %p1261_p8 = por %p1260_p4, %p1259_p5 }
 0x27a   : > { %p1257_p2 = pneg %p1256_p6 }
 0x27b   : > { %p1263_p12 = por %p1262_p0, %p1261_p8 }
 0x27d   : > { %p1264_p13 = pnand %p1263_p12, %p1257_p2 }
 0x27f   : > { %1267 = shalt.err (!%p1264_p13)
}
 0x280   : > { %s1334_s14 = smov 256   ;;  %s1335_s29 = smov 16  }
 0x281   : > { %1038 = dma.vmem_to_hbm [thread:$0]  (%p1782_p3), %s1705_s27, 2048, %s1703_s9, %s852_s24, %s1334_s14, %s1334_s14, %s1335_s29  }
 0x282 PF: > { %s882_s13 = sand.u32 1, %s1306_s21   ;;  %p1783_p7 = scmp.ne.s32.totalorder %s1774_s12, 0 }
 0x283   : > { %p1784_p10 = scmp.ge.s32.totalorder %s1326_s26, 2  ;;  %s883_s19 = scalar_lea.sflag [#allocation4], %s882_s13 }
 0x285   : > { %p1048_p9 = pnand %p1784_p10, %p1783_p7 }
 0x287   : > { %1301 = dma.done.wait (!%p1048_p9), %s883_s19, 2048  }
 0x288   : > { %1303 = vsyncadd (!%p1048_p9), %s883_s19, 4294965248  ;;  %s25_s26 = sadd.s32 1, %s1326_s26   ;;  %s1785_s10 = sld [smem:[#allocation11_spill]] }
 0x289   : > { %p22_p11 = scmp.ge.s32.totalorder %s25_s26, 4   ;;  %s1786_s21 = smov %s1310_s22 }
 0x28a   : > { %s1787_s22 = smov %s1314_s23  ;;  %s1788_s23 = smov %s1427_s11 }
 0x28b   : > { %s1789_s24 = smov %s1322_s25  ;;  %24 = sbr.rel (!%p22_p11) target bundleno = 10 (0xa), region = 102 }
 0x28e   : > { %s1790_s25 = smov %s1785_s10 }
 0x292   :  { %888 = vsyncpa [#allocation3], 1 }
 0x293   :  { %890 = vsyncpa [#allocation3 + $0x1], 1 }
 0x294   :  { %891 = vsyncpa [#allocation6], 1 }
 0x295   :  { %893 = vsyncpa [#allocation6 + $0x1], 1 }
 0x296   :  { %894 = vsyncpa [#allocation4], 1 }
 0x297   :  { %896 = vsyncpa [#allocation4 + $0x1], 1 }

</bundles_post_ra>
